<compile_context>
chip_gen: v7x
topology: tpu7x:2x2x1
jax: 0.10.0
libtpu: 0.0.40
codegen_flags: <defaults>
</compile_context>

<pallas_src>
import jax
import jax.numpy as jnp
from jax.experimental import pallas as pl
from jax.experimental.pallas import tpu as pltpu


def _identity_kernel(x_ref, o_ref):
    # Plain VMEM tile copy; fully hidden under the HBM DMAs.
    o_ref[...] = x_ref[...]


_MIB = 1024 * 1024


def _device_copy_params():
    """Generation-aware (block_bytes, vmem_limit_bytes) for the copy path."""
    try:
        kind = jax.devices()[0].device_kind.lower()
    except Exception:
        kind = ""
    if "v6" in kind:
        # v6e: 128 MiB VMEM, ~1.4 TB/s -> 8 MiB blocks, generous limit.
        return 8 * _MIB, 64 * _MIB
    if "7" in kind:
        # v7x: only 64 MiB VMEM, ~3.2 TB/s -> 8 MiB blocks (2 arrays x 2 bufs
        # x 8 MiB = 32 MiB), never 16 MiB blocks on this chip.
        return 8 * _MIB, 48 * _MIB
    # v5e and unknown: 4 MiB blocks are already <4% per-step overhead.
    return 4 * _MIB, 32 * _MIB


def _choose_cols(n):
    """Largest divisor of n that is a multiple of 128, capped at 8192 lanes."""
    m = n // 128  # n is guaranteed to be a multiple of 128 here
    for d in range(min(64, m), 0, -1):
        if m % d == 0:
            return 128 * d
    return 128


def _choose_tile_rows(rows, cols, itemsize, block_bytes):
    """Pick a row-tile that is a divisor of rows, a multiple of the native
    sublane packing, <= block_bytes per block, and gives >= 4-8 grid steps on
    tensors >= ~4 MiB (blocks kept >= ~1-2 MiB)."""
    sub = max(8, 32 // itemsize)  # dtype-aware sublane multiple (f32:8, bf16:16, i8:32)
    row_bytes = cols * itemsize
    total = rows * row_bytes

    # Cap from per-block byte budget.
    target = max(sub, (block_bytes // row_bytes) // sub * sub)

    # Ensure enough grid steps for DMA overlap on large tensors.
    if total >= 4 * _MIB:
        desired_steps = int(min(8, max(4, total // (2 * _MIB))))
        steps_cap = max(sub, (rows // desired_steps) // sub * sub)
        target = min(target, steps_cap)

    target = min(target, rows)

    def best_divisor(multiple):
        d = (target // multiple) * multiple
        while d >= multiple:
            if rows % d == 0:
                return d
            d -= multiple
        return None

    tile = best_divisor(sub)
    if tile is None and sub > 8:
        tile = best_divisor(8)  # still sublane-legal for f32 layout rules
    if tile is None:
        if rows <= target:
            return rows  # single full-extent block (exempt from (8,128) rule)
        # Fallback: non-divisor tile; last block is partial but still correct.
        tile = max(8, (target // 8) * 8)
    return tile


def _pallas_identity_copy(x: jax.Array) -> jax.Array:
    """Explicit HBM->VMEM->HBM copy via pallas_call (identity semantics)."""
    orig_shape = x.shape
    dtype = x.dtype
    n = int(x.size)
    itemsize = jnp.dtype(dtype).itemsize
    block_bytes, vmem_limit = _device_copy_params()

    if n == 0:
        return x

    if n % 128 != 0:
        # Ragged size: materialize a real copy with one full-extent block
        # (allowed since block_shape == array shape) when it fits in VMEM.
        if n * itemsize <= 4 * _MIB:
            x2 = x.reshape(1, n)
            out2 = pl.pallas_call(
                _identity_kernel,
                out_shape=jax.ShapeDtypeStruct((1, n), dtype),
                in_specs=[pl.BlockSpec((1, n), lambda: (0, 0))],
                out_specs=pl.BlockSpec((1, n), lambda: (0, 0)),
                compiler_params=pltpu.CompilerParams(
                    vmem_limit_bytes=vmem_limit),
            )(x2)
            return out2.reshape(orig_shape)
        # TODO(synk): very large ragged sizes fall back to returning x
        # unchanged (no distinct buffer) rather than padding/slicing in HBM.
        return x

    cols = _choose_cols(n)
    rows = n // cols
    tile_rows = _choose_tile_rows(rows, cols, itemsize, block_bytes)
    grid = (pl.cdiv(rows, tile_rows),)

    # Copy-free reshape (contiguous row-major) -- no pad, no slice.
    x2 = x.reshape(rows, cols)

    out2 = pl.pallas_call(
        _identity_kernel,
        out_shape=jax.ShapeDtypeStruct((rows, cols), dtype),
        grid_spec=pltpu.PrefetchScalarGridSpec(
            num_scalar_prefetch=0,
            grid=grid,
            in_specs=[pl.BlockSpec((tile_rows, cols), lambda i: (i, 0))],
            out_specs=pl.BlockSpec((tile_rows, cols), lambda i: (i, 0)),
        ),
        compiler_params=pltpu.CompilerParams(
            dimension_semantics=("parallel",),
            vmem_limit_bytes=vmem_limit,
        ),
    )(x2)

    return out2.reshape(orig_shape)


def identity(x: jax.Array, *, force_pallas: bool = False) -> jax.Array:
    """Identity: returns x unchanged (same shape, same dtype).

    Default path performs no work at all (zero HBM traffic) -- the optimal
    implementation of identity, and it also covers tensors too small to
    amortize any kernel-launch overhead.  Set `force_pallas=True` to route
    through the Pallas copy kernel (materializes a distinct buffer).
    """
    if not force_pallas:
        return x
    return _pallas_identity_copy(x)


if __name__ == "__main__":
    root = jax.random.PRNGKey(0)
    k0, k1, k2 = jax.random.split(root, 3)

    # NCHW input consistent with a typical conv-style module: (2, 4, 16, 16).
    x = jax.random.normal(k0, (2, 4, 16, 16), dtype=jnp.float32)

    # Fast path (the real identity: no kernel, no copy).
    y_fast = identity(x)
    jax.block_until_ready(y_fast)
    assert y_fast.shape == x.shape and y_fast.dtype == x.dtype
    assert bool(jnp.array_equal(y_fast, x))

    # Pallas kernel path (single lane-dense block for this small tensor).
    y = identity(x, force_pallas=True)
    jax.block_until_ready(y)
    assert y.shape == x.shape and y.dtype == x.dtype
    assert bool(jnp.array_equal(y, x))

    # Exercise the multi-step pipelined grid path (4 MiB -> >= 4 grid steps).
    xb = jax.random.normal(k1, (1024, 1024), dtype=jnp.float32)
    yb = identity(xb, force_pallas=True)
    jax.block_until_ready(yb)
    assert yb.shape == xb.shape and yb.dtype == xb.dtype
    assert bool(jnp.array_equal(yb, xb))

    # Exercise the ragged-size path (n % 128 != 0) -- now a real copy.
    xr = jax.random.normal(k2, (3, 5, 7), dtype=jnp.float32)
    yr = identity(xr, force_pallas=True)
    jax.block_until_ready(yr)
    assert yr.shape == xr.shape and yr.dtype == xr.dtype
    assert bool(jnp.array_equal(yr, xr))

    print("KERNEL_OK")
</pallas_src>

<mosaic_0001>
module attributes {stable_mosaic.version = 11 : i64} {
  func.func @_identity_kernel(%arg0: i32, %arg1: memref<1x2048xf32, #tpu.memory_space<vmem>>, %arg2: memref<1x2048xf32, #tpu.memory_space<vmem>>) attributes {dimension_semantics = [#tpu.dimension_semantics<parallel>], iteration_bounds = array<i64: 1>, scalar_prefetch = 0 : i64, scratch_operands = 0 : i64, tpu.core_type = #tpu.core_type<tc>, window_params = [{transform_indices = @transform_0, window_bounds = array<i64: 1, 2048>}, {transform_indices = @transform_1, window_bounds = array<i64: 1, 2048>}]} {
    %c0 = arith.constant 0 : index
    %c0_0 = arith.constant 0 : index
    %0 = vector.load %arg1[%c0, %c0_0] : memref<1x2048xf32, #tpu.memory_space<vmem>>, vector<1x2048xf32>
    %c0_1 = arith.constant 0 : index
    %c0_2 = arith.constant 0 : index
    %1 = vector.load %arg2[%c0_1, %c0_2] : memref<1x2048xf32, #tpu.memory_space<vmem>>, vector<1x2048xf32>
    tpu.vector_store %arg2[%c0_1, %c0_2], %0 {strides = array<i32>} : memref<1x2048xf32, #tpu.memory_space<vmem>>, vector<1x2048xf32>,
    return
  }
  func.func @transform_0(%arg0: i32) -> (i32, i32) {
    %c0_i32 = arith.constant 0 : i32
    %c0_i32_0 = arith.constant 0 : i32
    return %arg0, %c0_i32 : i32, i32
  }
  func.func @transform_1(%arg0: i32) -> (i32, i32) {
    %c0_i32 = arith.constant 0 : i32
    %c0_i32_0 = arith.constant 0 : i32
    return %arg0, %c0_i32 : i32, i32
  }
}

</mosaic_0001>

<bundles_post_ra>
// kernel: tpu_custom_call.1
= control target key start
LH: loop header
LB: loop body
LE: loop exit
PB: predicated region body
PF: predicated region fallthrough
CT: control target
= control target key end

     0   :  { %6 = vsyncpa [#allocation3], 0  ;;  %s126_s0 = inlined_call_operand.hbm [shape: f32[1,2048], index: 0, kind: input, shape index: {}]   ;;  %s127_s1 = inlined_call_operand.hbm [shape: f32[1,2048], index: 1, kind: output, shape index: {}]  }
   0x1   :  { %7 = vsyncpa [#allocation4], 0  ;;  %s90_s6 = smov [#allocation2]   ;;  %s42_s10 = scalar_lea.hbm %s126_s0, 256 }
   0x2   :  { %s14_s7 = sshll.u32 %s90_s6, 4  ;;  %p43_p0 = scmp.ne.s32.totalorder %s126_s0, %s42_s10  ;;  %s15_s7 = int_to_ptr.vmem [resolvable:$true] %s14_s7 }
   0x3   :  { %p46_p1 = scmp.lt.u32.totalorder %s42_s10, %s126_s0 }
   0x5   :  { %p48_p2 = pnand %p46_p1, %p43_p0 }
   0x7   :  { %51 = shalt.err (!%p48_p2)
}
   0x8   :  { %s52_s15 = scalar_lea.vmem %s15_s7, 256  ;;  %p57_p4 = scmp.lt.s32.totalorder %s15_s7, %s15_s7 }
   0x9   :  { %p53_p3 = scmp.ne.s32.totalorder %s15_s7, %s52_s15  ;;  %p58_p5 = scmp.lt.s32.totalorder %s52_s15, %s52_s15 }
   0xb   :  { %p59_p6 = por %p58_p5, %p57_p4 }
   0xd   :  { %p60_p7 = pnand %p59_p6, %p53_p3 }
   0xf   :  { %63 = shalt.err (!%p60_p7)
}
  0x10   :  { %17 = dma.hbm_to_vmem [thread:$0]  %s126_s0, 256, %s15_s7, [#allocation3]  }
  0x11   :  { %86 = dma.done.wait [#allocation3], 256  }
  0x12   :  { %87 = vsyncadd [#allocation3], 4294967040  ;;  %s91_s18 = smov [#allocation5]   ;;  %v21_v0 = vld [vmem:[#allocation2] sm:$0xff]  ;;  %v22_v1 = vld [vmem:[#allocation2 + $0x8] sm:$0xff] }
  0x13   :  { %s31_s19 = sshll.u32 %s91_s18, 4  ;;  %23 = vst [vmem:[#allocation5] sm:$0xff] %v21_v0  ;;  %24 = vst [vmem:[#allocation5 + $0x8] sm:$0xff] %v22_v1  ;;  %s32_s19 = int_to_ptr.vmem [resolvable:$true] %s31_s19 }
  0x14   :  { %s64_s20 = scalar_lea.vmem %s32_s19, 256  ;;  %p69_p9 = scmp.lt.s32.totalorder %s32_s19, %s32_s19 }
  0x15   :  { %p65_p8 = scmp.ne.s32.totalorder %s32_s19, %s64_s20  ;;  %p70_p10 = scmp.lt.s32.totalorder %s64_s20, %s64_s20 }
  0x17   :  { %p71_p11 = por %p70_p10, %p69_p9 }
  0x19   :  { %p72_p12 = pnand %p71_p11, %p65_p8 }
  0x1b   :  { %75 = shalt.err (!%p72_p12)
}
  0x1c   :  { %s76_s0 = scalar_lea.hbm %s127_s1, 256 }
  0x1d   :  { %p77_p13 = scmp.ne.s32.totalorder %s127_s1, %s76_s0  ;;  %p80_p0 = scmp.lt.u32.totalorder %s76_s0, %s127_s1 }
  0x1f   :  { %p82_p1 = pnand %p80_p0, %p77_p13 }
  0x21   :  { %85 = shalt.err (!%p82_p1)
}
  0x22   :  { %34 = dma.vmem_to_hbm [thread:$0]  %s32_s19, 256, %s127_s1, [#allocation4]  }
  0x23   :  { %88 = dma.done.wait [#allocation4], 256  }
  0x24   :  { %89 = vsyncadd [#allocation4], 4294967040 }
  0x25   :  { %38 = vsyncpa [#allocation3], 1 }
  0x26   :  { %39 = vsyncpa [#allocation4], 1 }

</bundles_post_ra>
